<compile_context>
chip_gen: v7x
topology: tpu7x:2x2x1
jax: 0.10.0
libtpu: 0.0.40
codegen_flags: <defaults>
</compile_context>

<pallas_src>
import functools

import jax
import jax.numpy as jnp
from jax.experimental import pallas as pl
from jax.experimental.pallas import tpu as pltpu


# ----------------------------------------------------------------------------
# "TrainConfig" equivalent (deterministic, in-script)
# ----------------------------------------------------------------------------
BINS = 10
BALANCE_ATTR_POS_PROP = 0.3

# edges = [i / bins for i in range(bins+1)]; edges[-1] += 1e-6
_EDGES = [float(x) / BINS for x in range(BINS + 1)]
_EDGES[-1] += 1e-06
EDGE_LO = _EDGES[0]     # edges[0]
EDGE_HI = _EDGES[BINS]  # edges[10]


def _round_up(x, m):
    return ((x + m - 1) // m) * m


def _choose_class_tile(batch, num_classes, itemsize):
    """Lane-aligned class tile: big enough to amortize grid-step overhead,
    small enough that 2 inputs x 2 pipeline buffers stay well under the
    scoped-VMEM defaults on v5e (16 MiB) / v7x (32 MiB of 64 MiB physical)."""
    budget = 8 * 1024 * 1024                    # bytes for 2 inputs x 2 buffers
    per_lane = 4 * batch * max(int(itemsize), 1)
    max_tile = max(128, (budget // per_lane) // 128 * 128)
    c128 = _round_up(max(num_classes, 1), 128)
    return int(min(1024, max_tile, c128))


# ----------------------------------------------------------------------------
# Pallas kernel (one class tile per grid step)
# ----------------------------------------------------------------------------
def _balance_loss_kernel(pred_ref, target_ref, out_ref, *,
                         batch, num_classes, class_tile,
                         balance_prop, edge_lo, edge_hi):
    x = pred_ref[...].astype(jnp.float32)       # [B, TC]
    t = target_ref[...].astype(jnp.float32)     # [B, TC] (0/1 hard labels)

    bsz = jnp.float32(batch)                    # batch_current_size (weights=1)
    balance_num = jnp.float32(balance_prop) * bsz

    # Single axis-0 reduction: per-class positive count.
    pos_sum = jnp.sum(t, axis=0, keepdims=True)          # [1, TC]
    neg_sum = bsz - pos_sum                               # [1, TC]
    pos_gt = (pos_sum >= balance_num).astype(jnp.float32)
    neg_gt = (neg_sum > balance_num).astype(jnp.float32)

    # Closed-form majority / minority counts (target is 0/1):
    #   n_maj = #samples with target == pos_gt ; n_min = #samples with target == neg_gt
    n_maj = pos_gt * pos_sum + (1.0 - pos_gt) * neg_sum   # [1, TC]
    n_min = neg_gt * pos_sum + (1.0 - neg_gt) * neg_sum   # [1, TC]

    # One exp feeds both the sigmoid and the stable BCE log term.
    e = jnp.exp(-jnp.abs(x))                              # exp(-|x|)
    inv1pe = 1.0 / (1.0 + e)
    sig = jnp.where(x >= 0.0, inv1pe, e * inv1pe)         # sigmoid(x), stable
    g = jnp.abs(sig - t)
    easy = jnp.logical_and(g >= jnp.float32(edge_lo), g < jnp.float32(edge_hi))

    maj_mask = t == pos_gt                                # [B, TC]
    min_mask = t == neg_gt                                # [B, TC]

    maj_factor = balance_num / jnp.maximum(n_maj, 1.0)    # [1, TC]
    min_factor = (bsz - balance_num) / jnp.maximum(n_min, 1.0)

    # Same order of operations as the PyTorch per-class loop:
    #  1) easy & majority -> 0   2) majority *= maj_factor
    #  3) minority *= min_factor (only if n_min > 0); overlap multiplies both.
    w = jnp.where(maj_mask, jnp.where(easy, 0.0, maj_factor), 1.0)
    w = jnp.where(jnp.logical_and(min_mask, n_min > 0.0), w * min_factor, w)

    # BCEWithLogitsLoss(reduction='none'), stable: max(x,0) - x*t + log1p(exp(-|x|))
    bce = jnp.maximum(x, 0.0) - x * t + jnp.log1p(e)

    # Mask out lane-padding classes beyond the real class count.
    lane = jax.lax.broadcasted_iota(jnp.int32, x.shape, 1)
    cls_idx = pl.program_id(0) * class_tile + lane
    loss = jnp.where(cls_idx < num_classes, bce * w, 0.0)

    # Lane-dense per-tile partial sum (wrapper reduces across tiles).
    out_ref[...] = jnp.zeros_like(out_ref) + jnp.sum(loss)


# ----------------------------------------------------------------------------
# Wrapper
# ----------------------------------------------------------------------------
def balance_loss(pred, target, *, balance_prop=BALANCE_ATTR_POS_PROP,
                 edge_lo=EDGE_LO, edge_hi=EDGE_HI):
    """Pallas implementation of BalanceLoss.forward. Returns a scalar f32."""
    assert pred.shape == target.shape and pred.ndim == 2
    batch, num_classes = pred.shape

    itemsize = max(jnp.dtype(pred.dtype).itemsize, jnp.dtype(target.dtype).itemsize)
    class_tile = _choose_class_tile(batch, num_classes, itemsize)
    c_pad = _round_up(num_classes, class_tile)
    if c_pad != num_classes:
        # Padded classes are masked out inside the kernel.
        pred = jnp.pad(pred, ((0, 0), (0, c_pad - num_classes)))
        target = jnp.pad(target, ((0, 0), (0, c_pad - num_classes)))
    num_tiles = c_pad // class_tile

    kernel = functools.partial(
        _balance_loss_kernel,
        batch=int(batch), num_classes=int(num_classes), class_tile=int(class_tile),
        balance_prop=float(balance_prop),
        edge_lo=float(edge_lo), edge_hi=float(edge_hi))

    partials = pl.pallas_call(
        kernel,
        out_shape=jax.ShapeDtypeStruct((8 * num_tiles, 128), jnp.float32),
        grid=(num_tiles,),
        in_specs=[
            pl.BlockSpec((batch, class_tile), lambda j: (0, j)),
            pl.BlockSpec((batch, class_tile), lambda j: (0, j)),
        ],
        out_specs=pl.BlockSpec((8, 128), lambda j: (j, 0)),
        compiler_params=pltpu.CompilerParams(
            dimension_semantics=("parallel",)),
    )(pred, target)

    # Each (8,128) block holds one broadcast partial sum; pick one lane per tile.
    per_tile = partials[0::8, 0]                       # [num_tiles]
    return jnp.sum(per_tile) / jnp.float32(batch * num_classes)


# ----------------------------------------------------------------------------
# Demo
# ----------------------------------------------------------------------------
if __name__ == "__main__":
    key = jax.random.PRNGKey(0)
    k_pred, k_tgt = jax.random.split(key)

    batch_num, class_num = 8, 16  # small [batch, class] shapes
    pred = jax.random.normal(k_pred, (batch_num, class_num), dtype=jnp.float32)
    target = jax.random.bernoulli(
        k_tgt, 0.4, (batch_num, class_num)).astype(jnp.float32)

    loss = balance_loss(pred, target)
    jax.block_until_ready(loss)
    print("KERNEL_OK")
</pallas_src>

<mosaic_0001>
module attributes {stable_mosaic.version = 11 : i64} {
  func.func @_balance_loss_kernel(%arg0: i32, %arg1: memref<8x128xf32, #tpu.memory_space<vmem>>, %arg2: memref<8x128xf32, #tpu.memory_space<vmem>>, %arg3: memref<8x128xf32, #tpu.memory_space<vmem>>) attributes {dimension_semantics = [#tpu.dimension_semantics<parallel>], iteration_bounds = array<i64: 1>, scalar_prefetch = 0 : i64, scratch_operands = 0 : i64, tpu.core_type = #tpu.core_type<tc>, window_params = [{transform_indices = @transform_0, window_bounds = array<i64: 8, 128>}, {transform_indices = @transform_1, window_bounds = array<i64: 8, 128>}, {transform_indices = @transform_2, window_bounds = array<i64: 8, 128>}]} {
    %c0 = arith.constant 0 : index
    %c0_0 = arith.constant 0 : index
    %0 = vector.load %arg1[%c0, %c0_0] : memref<8x128xf32, #tpu.memory_space<vmem>>, vector<8x128xf32>
    %c0_1 = arith.constant 0 : index
    %c0_2 = arith.constant 0 : index
    %1 = vector.load %arg2[%c0_1, %c0_2] : memref<8x128xf32, #tpu.memory_space<vmem>>, vector<8x128xf32>
    %cst = arith.constant 3.000000e-01 : f32
    %cst_3 = arith.constant 8.000000e+00 : f32
    %2 = arith.mulf %cst, %cst_3 : f32
    %cst_4 = arith.constant dense<0.000000e+00> : vector<128xf32>
    %3 = vector.multi_reduction <add>, %1, %cst_4 [0] : vector<8x128xf32> to vector<128xf32>
    %4 = vector.shape_cast %3 : vector<128xf32> to vector<1x128xf32>
    %cst_5 = arith.constant 8.000000e+00 : f32
    %5 = vector.broadcast %cst_5 : f32 to vector<1x128xf32>
    %6 = arith.subf %5, %4 : vector<1x128xf32>
    %7 = vector.broadcast %2 : f32 to vector<1x128xf32>
    %8 = arith.cmpf oge, %4, %7 : vector<1x128xf32>
    %9 = arith.extui %8 : vector<1x128xi1> to vector<1x128xi32>
    %10 = arith.sitofp %9 : vector<1x128xi32> to vector<1x128xf32>
    %11 = vector.broadcast %2 : f32 to vector<1x128xf32>
    %12 = arith.cmpf ogt, %6, %11 : vector<1x128xf32>
    %13 = arith.extui %12 : vector<1x128xi1> to vector<1x128xi32>
    %14 = arith.sitofp %13 : vector<1x128xi32> to vector<1x128xf32>
    %15 = arith.mulf %10, %4 : vector<1x128xf32>
    %cst_6 = arith.constant 1.000000e+00 : f32
    %16 = vector.broadcast %cst_6 : f32 to vector<1x128xf32>
    %17 = arith.subf %16, %10 : vector<1x128xf32>
    %18 = arith.mulf %17, %6 : vector<1x128xf32>
    %19 = arith.addf %15, %18 : vector<1x128xf32>
    %20 = arith.mulf %14, %4 : vector<1x128xf32>
    %cst_7 = arith.constant 1.000000e+00 : f32
    %21 = vector.broadcast %cst_7 : f32 to vector<1x128xf32>
    %22 = arith.subf %21, %14 : vector<1x128xf32>
    %23 = arith.mulf %22, %6 : vector<1x128xf32>
    %24 = arith.addf %20, %23 : vector<1x128xf32>
    %25 = math.absf %0 : vector<8x128xf32>
    %cst_8 = arith.constant 0.000000e+00 : f32
    %26 = vector.broadcast %cst_8 : f32 to vector<8x128xf32>
    %27 = arith.subf %26, %25 : vector<8x128xf32>
    %28 = math.exp %27 : vector<8x128xf32>
    %cst_9 = arith.constant 1.000000e+00 : f32
    %29 = vector.broadcast %cst_9 : f32 to vector<8x128xf32>
    %30 = arith.addf %29, %28 : vector<8x128xf32>
    %cst_10 = arith.constant 1.000000e+00 : f32
    %31 = vector.broadcast %cst_10 : f32 to vector<8x128xf32>
    %32 = arith.divf %31, %30 : vector<8x128xf32>
    %cst_11 = arith.constant 0.000000e+00 : f32
    %33 = vector.broadcast %cst_11 : f32 to vector<8x128xf32>
    %34 = arith.cmpf oge, %0, %33 : vector<8x128xf32>
    %35 = arith.mulf %28, %32 : vector<8x128xf32>
    %36 = arith.select %34, %32, %35 : vector<8x128xi1>, vector<8x128xf32>
    %37 = arith.subf %36, %1 : vector<8x128xf32>
    %38 = math.absf %37 : vector<8x128xf32>
    %cst_12 = arith.constant 0.000000e+00 : f32
    %39 = vector.broadcast %cst_12 : f32 to vector<8x128xf32>
    %40 = arith.cmpf oge, %38, %39 : vector<8x128xf32>
    %cst_13 = arith.constant 1.00000095 : f32
    %41 = vector.broadcast %cst_13 : f32 to vector<8x128xf32>
    %42 = arith.cmpf olt, %38, %41 : vector<8x128xf32>
    %43 = arith.andi %40, %42 : vector<8x128xi1>
    %44 = vector.broadcast %10 : vector<1x128xf32> to vector<8x128xf32>
    %45 = arith.cmpf oeq, %1, %44 : vector<8x128xf32>
    %46 = vector.broadcast %14 : vector<1x128xf32> to vector<8x128xf32>
    %47 = arith.cmpf oeq, %1, %46 : vector<8x128xf32>
    %cst_14 = arith.constant 1.000000e+00 : f32
    %48 = vector.broadcast %cst_14 : f32 to vector<1x128xf32>
    %49 = arith.maximumf %19, %48 : vector<1x128xf32>
    %50 = vector.broadcast %2 : f32 to vector<1x128xf32>
    %51 = arith.divf %50, %49 : vector<1x128xf32>
    %cst_15 = arith.constant 8.000000e+00 : f32
    %52 = arith.subf %cst_15, %2 : f32
    %cst_16 = arith.constant 1.000000e+00 : f32
    %53 = vector.broadcast %cst_16 : f32 to vector<1x128xf32>
    %54 = arith.maximumf %24, %53 : vector<1x128xf32>
    %55 = vector.broadcast %52 : f32 to vector<1x128xf32>
    %56 = arith.divf %55, %54 : vector<1x128xf32>
    %cst_17 = arith.constant 0.000000e+00 : f32
    %57 = vector.broadcast %cst_17 : f32 to vector<8x128xf32>
    %58 = vector.shape_cast %51 : vector<1x128xf32> to vector<1x128xf32>
    %59 = vector.broadcast %58 : vector<1x128xf32> to vector<8x128xf32>
    %60 = arith.select %43, %57, %59 : vector<8x128xi1>, vector<8x128xf32>
    %cst_18 = arith.constant 1.000000e+00 : f32
    %61 = vector.broadcast %cst_18 : f32 to vector<8x128xf32>
    %62 = arith.select %45, %60, %61 : vector<8x128xi1>, vector<8x128xf32>
    %cst_19 = arith.constant 0.000000e+00 : f32
    %63 = vector.broadcast %cst_19 : f32 to vector<1x128xf32>
    %64 = arith.cmpf ogt, %24, %63 : vector<1x128xf32>
    %65 = vector.broadcast %64 : vector<1x128xi1> to vector<8x128xi1>
    %66 = arith.andi %47, %65 : vector<8x128xi1>
    %67 = vector.broadcast %56 : vector<1x128xf32> to vector<8x128xf32>
    %68 = arith.mulf %62, %67 : vector<8x128xf32>
    %69 = arith.select %66, %68, %62 : vector<8x128xi1>, vector<8x128xf32>
    %cst_20 = arith.constant 0.000000e+00 : f32
    %70 = vector.broadcast %cst_20 : f32 to vector<8x128xf32>
    %71 = arith.maximumf %0, %70 : vector<8x128xf32>
    %72 = arith.mulf %0, %1 : vector<8x128xf32>
    %73 = arith.subf %71, %72 : vector<8x128xf32>
    %74 = math.log1p %28 : vector<8x128xf32>
    %75 = arith.addf %73, %74 : vector<8x128xf32>
    %76 = tpu.iota {dimensions = array<i32: 1>} : vector<8x128xi32>
    %c128_i32 = arith.constant 128 : i32
    %77 = arith.muli %arg0, %c128_i32 : i32
    %78 = vector.broadcast %77 : i32 to vector<8x128xi32>
    %79 = arith.addi %78, %76 : vector<8x128xi32>
    %c16_i32 = arith.constant 16 : i32
    %80 = vector.broadcast %c16_i32 : i32 to vector<8x128xi32>
    %81 = arith.cmpi slt, %79, %80 : vector<8x128xi32>
    %82 = arith.mulf %75, %69 : vector<8x128xf32>
    %cst_21 = arith.constant 0.000000e+00 : f32
    %83 = vector.broadcast %cst_21 : f32 to vector<8x128xf32>
    %84 = arith.select %81, %82, %83 : vector<8x128xi1>, vector<8x128xf32>
    %cst_22 = arith.constant 0.000000e+00 : f32
    %85 = vector.broadcast %cst_22 : f32 to vector<8x128xf32>
    %86 = vector.shape_cast %84 : vector<8x128xf32> to vector<1x8x128xf32>
    %cst_23 = arith.constant dense<0.000000e+00> : vector<1xf32>
    %87 = vector.multi_reduction <add>, %86, %cst_23 [1, 2] : vector<1x8x128xf32> to vector<1xf32>
    %88 = vector.shape_cast %87 : vector<1xf32> to vector<1x1x1xf32>
    %89 = vector.extract %88[0, 0, 0] : f32 from vector<1x1x1xf32>
    %90 = vector.broadcast %89 : f32 to vector<8x128xf32>
    %91 = arith.addf %85, %90 : vector<8x128xf32>
    %c0_24 = arith.constant 0 : index
    %c0_25 = arith.constant 0 : index
    %92 = vector.load %arg3[%c0_24, %c0_25] : memref<8x128xf32, #tpu.memory_space<vmem>>, vector<8x128xf32>
    tpu.vector_store %arg3[%c0_24, %c0_25], %91 {strides = array<i32>} : memref<8x128xf32, #tpu.memory_space<vmem>>, vector<8x128xf32>,
    return
  }
  func.func @transform_0(%arg0: i32) -> (i32, i32) {
    %c0_i32 = arith.constant 0 : i32
    %c0_i32_0 = arith.constant 0 : i32
    return %c0_i32, %arg0 : i32, i32
  }
  func.func @transform_1(%arg0: i32) -> (i32, i32) {
    %c0_i32 = arith.constant 0 : i32
    %c0_i32_0 = arith.constant 0 : i32
    return %c0_i32, %arg0 : i32, i32
  }
  func.func @transform_2(%arg0: i32) -> (i32, i32) {
    %c0_i32 = arith.constant 0 : i32
    %c0_i32_0 = arith.constant 0 : i32
    return %arg0, %c0_i32 : i32, i32
  }
}

</mosaic_0001>

<bundles_post_ra>
// kernel: tpu_custom_call.1
= control target key start
LH: loop header
LB: loop body
LE: loop exit
PB: predicated region body
PF: predicated region fallthrough
CT: control target
= control target key end

     0   :  { %7 = vsyncpa [#allocation3], 0  ;;  %s298_s0 = inlined_call_operand.hbm [shape: f32[8,128], index: 0, kind: input, shape index: {}]   ;;  %s299_s1 = inlined_call_operand.hbm [shape: f32[8,128], index: 1, kind: input, shape index: {}]   ;;  %s300_s2 = inlined_call_operand.hbm [shape: f32[8,128], index: 2, kind: output, shape index: {}]  }
   0x1   :  { %8 = vsyncpa [#allocation6], 0 }
   0x2   :  { %9 = vsyncpa [#allocation4], 0  ;;  %s229_s9 = smov [#allocation2]   ;;  %s230_s11 = smov [#allocation5]  }
   0x3   :  { %s16_s10 = sshll.u32 %s229_s9, 4  ;;  %s26_s12 = sshll.u32 %s230_s11, 4  ;;  %s17_s10 = int_to_ptr.vmem [resolvable:$true] %s16_s10  ;;  %s27_s12 = int_to_ptr.vmem [resolvable:$true] %s26_s12 }
   0x4   :  { %s157_s15 = scalar_lea.hbm %s298_s0, 128 }
   0x5   :  { %p158_p0 = scmp.ne.s32.totalorder %s298_s0, %s157_s15  ;;  %p161_p1 = scmp.lt.u32.totalorder %s157_s15, %s298_s0 }
   0x7   :  { %p163_p2 = pnand %p161_p1, %p158_p0 }
   0x9   :  { %166 = shalt.err (!%p163_p2)
}
   0xa   :  { %s167_s20 = scalar_lea.vmem %s17_s10, 128  ;;  %p172_p4 = scmp.lt.s32.totalorder %s17_s10, %s17_s10 }
   0xb   :  { %p168_p3 = scmp.ne.s32.totalorder %s17_s10, %s167_s20  ;;  %p173_p5 = scmp.lt.s32.totalorder %s167_s20, %s167_s20 }
   0xd   :  { %p174_p6 = por %p173_p5, %p172_p4 }
   0xf   :  { %p175_p7 = pnand %p174_p6, %p168_p3 }
  0x11   :  { %178 = shalt.err (!%p175_p7)
}
  0x12   :  { %19 = dma.hbm_to_vmem [thread:$0]  %s298_s0, 128, %s17_s10, [#allocation3]  }
  0x13   :  { %s179_s25 = scalar_lea.hbm %s299_s1, 128 }
  0x14   :  { %p180_p8 = scmp.ne.s32.totalorder %s299_s1, %s179_s25  ;;  %p183_p9 = scmp.lt.u32.totalorder %s179_s25, %s299_s1 }
  0x16   :  { %p185_p10 = pnand %p183_p9, %p180_p8 }
  0x18   :  { %188 = shalt.err (!%p185_p10)
}
  0x19   :  { %s189_s30 = scalar_lea.vmem %s27_s12, 128  ;;  %p194_p12 = scmp.lt.s32.totalorder %s27_s12, %s27_s12 }
  0x1a   :  { %p190_p11 = scmp.ne.s32.totalorder %s27_s12, %s189_s30  ;;  %p195_p13 = scmp.lt.s32.totalorder %s189_s30, %s189_s30 }
  0x1c   :  { %p196_p0 = por %p195_p13, %p194_p12 }
  0x1e   :  { %p197_p1 = pnand %p196_p0, %p190_p11 }
  0x20   :  { %200 = shalt.err (!%p197_p1)
}
  0x21   :  { %29 = dma.hbm_to_vmem [thread:$0]  %s299_s1, 128, %s27_s12, [#allocation6]  }
  0x22   :  { %223 = dma.done.wait [#allocation3], 128  }
  0x23   :  { %224 = vsyncadd [#allocation3], 4294967168 }
  0x24   :  { %225 = dma.done.wait [#allocation6], 128  }
  0x25   :  { %226 = vsyncadd [#allocation6], 4294967168  ;;  %v36_v0 = vld [vmem:[#allocation2] sm:$0xff]  ;;  %v272_v1 = vld [vmem:[#allocation5] sm:$0xff]  ;;  %v231_v12 = vmov 0.0   ;;  %v103_v44 = vlaneseq  ;;  %s232_s1 = smov [#allocation7]  }
  0x26   :  { %v38_v2 = vrot.slane %v272_v1, 4  ;;  %v59_v3 = vand.u32 2147483647, %v36_v0  ;;  %vm66_vm2 = vcmp.ge.f32.partialorder %v36_v0, 0.0  ;;  %v90_v35 = vmax.f32 %v36_v0, 0.0  ;;  %s129_s4 = sshll.u32 %s232_s1, 4  ;;  %s130_s4 = int_to_ptr.vmem [resolvable:$true] %s129_s4 }
  0x27   :  { %v91_v36 = vmul.f32 %v272_v1, %v36_v0  ;;  %v104_v49 = vand.u32 127, %v103_v44  ;;  %s201_s6 = scalar_lea.vmem %s130_s4, 128  ;;  %p206_p3 = scmp.lt.s32.totalorder %s130_s4, %s130_s4 }
  0x28   :  { %v39_v4 = vadd.f32 %v38_v2, %v272_v1  ;;  %v60_v5 = vsub.f32 0.0, %v59_v3  ;;  %p202_p2 = scmp.ne.s32.totalorder %s130_s4, %s201_s6  ;;  %p207_p4 = scmp.lt.s32.totalorder %s201_s6, %s201_s6 }
  0x29   :  { %v92_v45 = vsub.f32 %v90_v35, %v91_v36  ;;  %vm108_vm11 = vcmp.lt.s32.totalorder %v104_v49, 16 }
  0x2a   :  { %v40_v6 = vrot.slane %v39_v4, 2  ;;  %v61_v7 = vmul.f32 1.442695, %v60_v5  ;;  %p208_p5 = por %p207_p4, %p206_p3 }
  0x2c   :  { %v41_v8 = vadd.f32 %v40_v6, %v39_v4  ;;  %147 = vpow2.f32 %v61_v7  ;;  %p209_p6 = pnand %p208_p5, %p202_p2 }
  0x2e   :  { %v42_v9 = vrot.slane %v41_v8, 1 }
  0x30   :  { %v43_v10 = vadd.f32 %v42_v9, %v41_v8 }
  0x32   :  { %v44_v11 = vsub.f32 8.0, %v43_v10  ;;  %vm45_vm0 = vcmp.ge.f32.partialorder %v43_v10, 2.4 }
  0x33   :  { %v139_v13 = vsel %vm45_vm0, 1.0, %v231_v12 }
  0x34   :  { %vm48_vm1 = vcmp.gt.f32.partialorder %v44_v11, 2.4  ;;  %v51_v14 = vmul.f32 %v139_v13, %v43_v10  ;;  %v52_v15 = vsub.f32 1.0, %v139_v13  ;;  %vm74_vm4 = vcmp.eq.f32.partialorder %v272_v1, %v139_v13 }
  0x35   :  { %v140_v16 = vsel %vm48_vm1, 1.0, %v231_v12 }
  0x36   :  { %v148_v17 = vpop.eup %147  ;;  %v53_v18 = vmul.f32 %v52_v15, %v44_v11  ;;  %v55_v19 = vmul.f32 %v140_v16, %v43_v10  ;;  %v56_v20 = vsub.f32 1.0, %v140_v16  ;;  %vm75_vm5 = vcmp.eq.f32.partialorder %v272_v1, %v140_v16 }
  0x37   :  { %v63_v21 = vadd.f32 1.0, %v148_v17  ;;  %v96_v27 = vmul.f32 -0.5, %v148_v17  ;;  %v99_v32 = vand.u32 2147483647, %v148_v17 }
  0x38   :  { %v54_v22 = vadd.f32 %v53_v18, %v51_v14  ;;  %v57_v23 = vmul.f32 %v56_v20, %v44_v11 }
  0x39   :  { %149 = vrcp.f32 %v63_v21  ;;  %v97_v29 = vadd.f32 1.0, %v96_v27  ;;  %vm278_vm3 = vcmp.lt.f32.partialorder %v99_v32, 0.0004427343 }
  0x3a   :  { %v58_v24 = vadd.f32 %v57_v23, %v55_v19  ;;  %v76_v25 = vmax.f32 %v54_v22, 1.0  ;;  %151 = vlog2.f32 %v63_v21 }
  0x3b   :  { %v98_v39 = vmul.f32 %v148_v17, %v97_v29 }
  0x3c   :  { %153 = vrcp.f32 %v76_v25  ;;  %v79_v26 = vmax.f32 %v58_v24, 1.0  ;;  %vm84_vm6 = vcmp.gt.f32.partialorder %v58_v24, 0.0 }
  0x3d   :  { %vm87_vm10 = vmand %vm75_vm5, %vm84_vm6 }
  0x3e   :  { %155 = vrcp.f32 %v79_v26 }
  0x43   :  { %v150_v28 = vpop.eup %149 }
  0x44   :  { %v152_v30 = vpop.eup %151  ;;  %v67_v31 = vmul.f32 %v150_v28, %v148_v17 }
  0x45   :  { %v95_v38 = vmul.f32 0.6931472, %v152_v30 }
  0x46   :  { %v154_v33 = vpop.eup %153  ;;  %v68_v34 = vsel %vm66_vm2, %v150_v28, %v67_v31 }
  0x47   :  { %v69_v37 = vsub.f32 %v68_v34, %v272_v1  ;;  %v78_v43 = vmul.f32 2.4, %v154_v33  ;;  %v101_v47 = vsel %vm278_vm3, %v98_v39, %v95_v38 }
  0x48   :  { %v156_v40 = vpop.eup %155  ;;  %v102_v51 = vadd.f32 %v101_v47, %v92_v45 }
  0x49   :  { %v70_v42 = vand.u32 2147483647, %v69_v37  ;;  %v81_v46 = vmul.f32 5.6, %v156_v40 }
  0x4b   :  { %vm71_vm7 = vcmp.ge.f32.partialorder %v70_v42, 0.0  ;;  %vm72_vm8 = vcmp.lt.f32.partialorder %v70_v42, 1.000001 }
  0x4c   :  { %vm73_vm9 = vmand %vm71_vm7, %vm72_vm8 }
  0x4d   :  { %v82_v48 = vsel %vm73_vm9, 0.0, %v78_v43 }
  0x4e   :  { %v83_v50 = vsel %vm74_vm4, %v82_v48, 1.0 }
  0x4f   :  { %v88_v52 = vmul.f32 %v83_v50, %v81_v46 }
  0x51   :  { %v89_v53 = vsel %vm87_vm10, %v88_v52, %v83_v50 }
  0x52   :  { %v109_v54 = vmul.f32 %v102_v51, %v89_v53 }
  0x54   :  { %v110_v55 = vsel %vm108_vm11, %v109_v54, 0.0 }
  0x55   :  { %111 = vadd.xlane.f32.xlu0 %v110_v55 }
  0xe2   :  { %v112_v56 = vpop.xlane.xlu0 %111 }
  0xe3   :  { %v113_v57 = vrot.slane %v112_v56, 4 }
  0xe5   :  { %v114_v58 = vadd.f32 %v113_v57, %v112_v56 }
  0xe7   :  { %v115_v59 = vrot.slane %v114_v58, 2 }
  0xe9   :  { %v116_v60 = vadd.f32 %v115_v59, %v114_v58 }
  0xeb   :  { %v117_v61 = vrot.slane %v116_v60, 1 }
  0xed   :  { %v118_v62 = vadd.f32 %v117_v61, %v116_v60 }
  0xef   :  { %141 = vpush %v118_v62 }
 0x120   :  { %s142_s5 = spop %141 }
 0x121   :  { %v120_v63 = vstv %s142_s5 }
 0x122   :  { %122 = vst [vmem:[#allocation7] sm:$0xff] %v120_v63 }
 0x123   :  { %212 = shalt.err (!%p209_p6)
}
 0x124   :  { %s213_s9 = scalar_lea.hbm %s300_s2, 128 }
 0x125   :  { %p214_p7 = scmp.ne.s32.totalorder %s300_s2, %s213_s9  ;;  %p217_p8 = scmp.lt.u32.totalorder %s213_s9, %s300_s2 }
 0x127   :  { %p219_p9 = pnand %p217_p8, %p214_p7 }
 0x129   :  { %222 = shalt.err (!%p219_p9)
}
 0x12a   :  { %132 = dma.vmem_to_hbm [thread:$0]  %s130_s4, 128, %s300_s2, [#allocation4]  }
 0x12b   :  { %227 = dma.done.wait [#allocation4], 128  }
 0x12c   :  { %228 = vsyncadd [#allocation4], 4294967168 }
 0x12d   :  { %136 = vsyncpa [#allocation3], 1 }
 0x12e   :  { %137 = vsyncpa [#allocation6], 1 }
 0x12f   :  { %138 = vsyncpa [#allocation4], 1 }

</bundles_post_ra>
